<compile_context>
chip_gen: v6e
topology: v6e:2x2x1
jax: 0.10.0
libtpu: 0.0.40
codegen_flags: <defaults>
</compile_context>

<pallas_src>
import functools

import jax
import jax.numpy as jnp
from jax.experimental import pallas as pl
from jax.experimental.pallas import tpu as pltpu


def ann_kernel(x_ref, w1_ref, b1_ref, w2_ref, b2_ref, o_ref):
    # Feature-major layout: the batch rides the lane (last) axis, so both
    # sigmoids and the output store are fully lane-dense.
    #   x_ref : (9,  TILE_B)    w1_ref: (12, 9)   b1_ref: (12, 1)
    #   o_ref : (1,  TILE_B)    w2_ref: (1, 12)   b2_ref: (1, 1)
    x = x_ref[...]
    # Layer 1: (12, 9) @ (9, T) -> (12, T); bias broadcast over lanes.
    h = jnp.dot(w1_ref[...], x, preferred_element_type=jnp.float32)
    h = jax.nn.sigmoid(h + b1_ref[...])
    # Layer 2: (1, 12) @ (12, T) -> (1, T); scalar bias.
    y = jnp.dot(w2_ref[...], h, preferred_element_type=jnp.float32)
    y = jax.nn.sigmoid(y + b2_ref[...])
    o_ref[...] = y.astype(o_ref.dtype)


@functools.partial(jax.jit, static_argnames=("tile_b", "feature_major"))
def ann_forward(x, w1, b1, w2, b2, *, tile_b=65536, feature_major=False):
    """Forward pass of the 9 -> 12 -> 1 sigmoid MLP.

    x : (B, 9) float32 (batch-major, PyTorch layout), or (9, B) when
        feature_major=True (skips the one remaining XLA transpose).
    w1: (12, 9), b1: (12, 1), w2: (1, 12), b2: (1, 1)  (PyTorch Linear layout).
    Returns (B, 1) float32.
    """
    if feature_major:
        xt = x.astype(jnp.float32)                    # (9, B): already lane-dense
    else:
        xt = jnp.transpose(x).astype(jnp.float32)     # (B, 9) -> (9, B)
    B = xt.shape[1]

    # Lane-aligned batch tile.  No padding of x is ever materialized: the last
    # grid step may be ragged (input DMA clipped, OOB stores masked).
    tile_b = max(128, (int(tile_b) // 128) * 128)     # defensive 128-alignment
    if B < 128:
        tile = B                                      # single full-extent block
    else:
        tile = min(tile_b, (B // 128) * 128)          # multiple of 128, <= B
    grid = (pl.cdiv(B, tile),)

    cost = pl.CostEstimate(
        flops=240 * B,                    # 2*(9*12 + 12*1) MACs per row
        transcendentals=13 * B,           # 12 + 1 sigmoids per row
        bytes_accessed=40 * B + 4 * (w1.size + b1.size + w2.size + b2.size),
    )

    out = pl.pallas_call(
        ann_kernel,
        out_shape=jax.ShapeDtypeStruct((1, B), jnp.float32),
        grid=grid,
        in_specs=[
            pl.BlockSpec((9, tile), lambda i: (0, i)),   # x: streamed batch tiles
            pl.BlockSpec((12, 9), lambda i: (0, 0)),     # params: VMEM-resident
            pl.BlockSpec((12, 1), lambda i: (0, 0)),
            pl.BlockSpec((1, 12), lambda i: (0, 0)),
            pl.BlockSpec((1, 1), lambda i: (0, 0)),
        ],
        out_specs=pl.BlockSpec((1, tile), lambda i: (0, i)),  # lane-dense slab
        compiler_params=pltpu.CompilerParams(
            # "parallel" lets v7x shard the batch grid across its two
            # TensorCores; no-op on single-TC v5e/v6e.
            dimension_semantics=("parallel",),
            vmem_limit_bytes=48 * 1024 * 1024,
        ),
        cost_estimate=cost,
    )(xt, w1, b1, w2, b2)

    # (1, B) -> (B, 1): pure reshape of the lane-dense slab (no wide transpose).
    return jnp.reshape(out, (B, 1))


def init_params(key):
    """Deterministic init mimicking PyTorch Linear (U[-1/sqrt(fan_in), +])."""
    k1, k2, k3, k4 = jax.random.split(key, 4)
    bound1 = 1.0 / jnp.sqrt(9.0)
    bound2 = 1.0 / jnp.sqrt(12.0)
    # Stored in PyTorch Linear layout: (out_features, in_features).
    w1 = jax.random.uniform(k1, (12, 9), jnp.float32, -bound1, bound1)
    b1 = jax.random.uniform(k2, (12, 1), jnp.float32, -bound1, bound1)
    w2 = jax.random.uniform(k3, (1, 12), jnp.float32, -bound2, bound2)
    b2 = jax.random.uniform(k4, (1, 1), jnp.float32, -bound2, bound2)
    return w1, b1, w2, b2


def _reference(x, w1, b1, w2, b2):
    h = jax.nn.sigmoid(x @ w1.T + b1.T)
    return jax.nn.sigmoid(h @ w2.T + b2.T)


if __name__ == "__main__":
    key = jax.random.PRNGKey(0)
    kx, kx2, kp = jax.random.split(key, 3)
    w1, b1, w2, b2 = init_params(kp)

    # Small batch: single full-extent block (block == array, no tiling).
    x8 = jax.random.normal(kx, (8, 9), jnp.float32)
    y8 = ann_forward(x8, w1, b1, w2, b2)
    jax.block_until_ready(y8)
    assert y8.shape == (8, 1)
    assert jnp.allclose(y8, _reference(x8, w1, b1, w2, b2), atol=1e-5, rtol=1e-5)

    # Batch that exercises lane tiling + a ragged final block (tile=256, grid=2).
    x300 = jax.random.normal(kx2, (300, 9), jnp.float32)
    y300 = ann_forward(x300, w1, b1, w2, b2)
    jax.block_until_ready(y300)
    assert y300.shape == (300, 1)
    assert jnp.allclose(y300, _reference(x300, w1, b1, w2, b2), atol=1e-5, rtol=1e-5)

    # Feature-major fast path: producer hands x as (9, B), no XLA transpose.
    y_fm = ann_forward(jnp.transpose(x8), w1, b1, w2, b2, feature_major=True)
    jax.block_until_ready(y_fm)
    assert jnp.allclose(y_fm, y8, atol=1e-6, rtol=1e-6)

    print("KERNEL_OK")
</pallas_src>

<mosaic_0001>
module attributes {stable_mosaic.version = 11 : i64} {
  func.func @ann_kernel(%arg0: i32, %arg1: memref<9x8xf32, #tpu.memory_space<vmem>>, %arg2: memref<12x9xf32, #tpu.memory_space<vmem>>, %arg3: memref<12x1xf32, #tpu.memory_space<vmem>>, %arg4: memref<1x12xf32, #tpu.memory_space<vmem>>, %arg5: memref<1x1xf32, #tpu.memory_space<vmem>>, %arg6: memref<1x8xf32, #tpu.memory_space<vmem>>) attributes {dimension_semantics = [#tpu.dimension_semantics<parallel>], iteration_bounds = array<i64: 1>, scalar_prefetch = 0 : i64, scratch_operands = 0 : i64, tpu.core_type = #tpu.core_type<tc>, window_params = [{transform_indices = @transform_0, window_bounds = array<i64: 9, 8>}, {pipeline_mode = #tpu.pipeline_mode<synchronous>, transform_indices = @transform_1, window_bounds = array<i64: 12, 9>}, {pipeline_mode = #tpu.pipeline_mode<synchronous>, transform_indices = @transform_2, window_bounds = array<i64: 12, 1>}, {pipeline_mode = #tpu.pipeline_mode<synchronous>, transform_indices = @transform_3, window_bounds = array<i64: 1, 12>}, {pipeline_mode = #tpu.pipeline_mode<synchronous>, transform_indices = @transform_4, window_bounds = array<i64: 1, 1>}, {transform_indices = @transform_5, window_bounds = array<i64: 1, 8>}]} {
    %c0 = arith.constant 0 : index
    %c0_0 = arith.constant 0 : index
    %0 = vector.load %arg1[%c0, %c0_0] : memref<9x8xf32, #tpu.memory_space<vmem>>, vector<9x8xf32>
    %c0_1 = arith.constant 0 : index
    %c0_2 = arith.constant 0 : index
    %1 = vector.load %arg2[%c0_1, %c0_2] : memref<12x9xf32, #tpu.memory_space<vmem>>, vector<12x9xf32>
    %cst = arith.constant dense<0.000000e+00> : vector<12x8xf32>
    %2 = tpu.matmul %1, %0, %cst {dimension_numbers = #tpu.dot_dimension_numbers<[1], [0], [0], [1], [0, 0, 1, 1], [], []>} : vector<12x9xf32>, vector<9x8xf32>, vector<12x8xf32> -> vector<12x8xf32>
    %c0_3 = arith.constant 0 : index
    %c0_4 = arith.constant 0 : index
    %3 = vector.load %arg3[%c0_3, %c0_4] : memref<12x1xf32, #tpu.memory_space<vmem>>, vector<12x1xf32>
    %4 = vector.broadcast %3 : vector<12x1xf32> to vector<12x8xf32>
    %5 = arith.addf %2, %4 : vector<12x8xf32>
    %6 = arith.negf %5 : vector<12x8xf32>
    %7 = math.exp %6 : vector<12x8xf32>
    %cst_5 = arith.constant 1.000000e+00 : f32
    %8 = vector.broadcast %cst_5 : f32 to vector<12x8xf32>
    %9 = arith.addf %8, %7 : vector<12x8xf32>
    %10 = arith.divf %8, %9 : vector<12x8xf32>
    %c0_6 = arith.constant 0 : index
    %c0_7 = arith.constant 0 : index
    %11 = vector.load %arg4[%c0_6, %c0_7] : memref<1x12xf32, #tpu.memory_space<vmem>>, vector<1x12xf32>
    %cst_8 = arith.constant dense<0.000000e+00> : vector<1x8xf32>
    %12 = tpu.matmul %11, %10, %cst_8 {dimension_numbers = #tpu.dot_dimension_numbers<[1], [0], [0], [1], [0, 0, 1, 1], [], []>} : vector<1x12xf32>, vector<12x8xf32>, vector<1x8xf32> -> vector<1x8xf32>
    %c0_9 = arith.constant 0 : index
    %c0_10 = arith.constant 0 : index
    %13 = vector.load %arg5[%c0_9, %c0_10] : memref<1x1xf32, #tpu.memory_space<vmem>>, vector<1x1xf32>
    %14 = vector.broadcast %13 : vector<1x1xf32> to vector<1x8xf32>
    %15 = arith.addf %12, %14 : vector<1x8xf32>
    %16 = arith.negf %15 : vector<1x8xf32>
    %17 = math.exp %16 : vector<1x8xf32>
    %cst_11 = arith.constant 1.000000e+00 : f32
    %18 = vector.broadcast %cst_11 : f32 to vector<1x8xf32>
    %19 = arith.addf %18, %17 : vector<1x8xf32>
    %20 = arith.divf %18, %19 : vector<1x8xf32>
    %c0_12 = arith.constant 0 : index
    %c0_13 = arith.constant 0 : index
    %21 = vector.load %arg6[%c0_12, %c0_13] : memref<1x8xf32, #tpu.memory_space<vmem>>, vector<1x8xf32>
    tpu.vector_store %arg6[%c0_12, %c0_13], %20 {strides = array<i32>} : memref<1x8xf32, #tpu.memory_space<vmem>>, vector<1x8xf32>,
    return
  }
  func.func @transform_0(%arg0: i32) -> (i32, i32) {
    %c0_i32 = arith.constant 0 : i32
    %c0_i32_0 = arith.constant 0 : i32
    return %c0_i32, %arg0 : i32, i32
  }
  func.func @transform_1(%arg0: i32) -> (i32, i32) {
    %c0_i32 = arith.constant 0 : i32
    %c0_i32_0 = arith.constant 0 : i32
    %c0_i32_1 = arith.constant 0 : i32
    return %c0_i32, %c0_i32_0 : i32, i32
  }
  func.func @transform_2(%arg0: i32) -> (i32, i32) {
    %c0_i32 = arith.constant 0 : i32
    %c0_i32_0 = arith.constant 0 : i32
    %c0_i32_1 = arith.constant 0 : i32
    return %c0_i32, %c0_i32_0 : i32, i32
  }
  func.func @transform_3(%arg0: i32) -> (i32, i32) {
    %c0_i32 = arith.constant 0 : i32
    %c0_i32_0 = arith.constant 0 : i32
    %c0_i32_1 = arith.constant 0 : i32
    return %c0_i32, %c0_i32_0 : i32, i32
  }
  func.func @transform_4(%arg0: i32) -> (i32, i32) {
    %c0_i32 = arith.constant 0 : i32
    %c0_i32_0 = arith.constant 0 : i32
    %c0_i32_1 = arith.constant 0 : i32
    return %c0_i32, %c0_i32_0 : i32, i32
  }
  func.func @transform_5(%arg0: i32) -> (i32, i32) {
    %c0_i32 = arith.constant 0 : i32
    %c0_i32_0 = arith.constant 0 : i32
    return %c0_i32, %arg0 : i32, i32
  }
}

</mosaic_0001>

<bundles_post_ra>
// kernel: ann_forward.1
= control target key start
LH: loop header
LB: loop body
LE: loop exit
PB: predicated region body
PF: predicated region fallthrough
CT: control target
= control target key end

     0   :  { %s378_s0 = inlined_call_operand.vmem [shape: f32[9,8], index: 0, kind: input, shape index: {}]   ;;  %s379_s1 = inlined_call_operand.vmem [shape: f32[12,9], index: 1, kind: input, shape index: {}]   ;;  %s380_s2 = inlined_call_operand.vmem [shape: f32[12,1], index: 2, kind: input, shape index: {}]   ;;  %s381_s3 = inlined_call_operand.vmem [shape: f32[1,12], index: 3, kind: input, shape index: {}]   ;;  %s382_s4 = inlined_call_operand.<no memory space> [shape: f32[1,1], index: 4, kind: input, shape index: {}]   ;;  %s383_s5 = inlined_call_operand.hbm [shape: f32[1,8], index: 5, kind: output, shape index: {}]  }
   0x1   :  { %v10_v0 = vstv %s382_s4 }
   0x2   :  { %11 = vst [vmem:[#allocation2] sm:$0x1] %v10_v0 }
   0x3   :  { %v24_v1 = vld [vmem:[%s378_s0 + $0x8] sm:$0x1]  ;;  %vm46_vm0 = vcmask 1040384   ;;  %v23_v2 = vld [vmem:[%s378_s0] sm:$0xff]  ;;  %vm39_vm1 = vcmask 72704   ;;  %v317_v6 = vmov 0  }
   0x4   :  { %v25_v3 = vld [vmem:[%s379_s1] sm:$0xff]  ;;  %263 = vmatprep.subr.msk.mxu0 %vm46_vm0, %v24_v1  ;;  %v28_v4 = vld [vmem:[%s380_s2 + $0x8] sm:$0xf]  ;;  %281 = vset.pattern.permute.xlu0 %v317_v6 }
   0x5   :  { %267 = vmatprep.mubr.msk.f32.mxu0 %vm39_vm1, %v25_v3  ;;  %264 = vmatpush3.msk.msra.mxu0 %vm46_vm0, %v24_v1  ;;  %v26_v5 = vld [vmem:[%s379_s1 + $0x8] sm:$0xf] }
   0x6   :  { %12 = vsyncpa [#allocation4], 0  ;;  %265 = vmatprep.subr.mxu0 %v23_v2  ;;  %36 = vperm.xlu0 %281, %v28_v4   ;;  %v27_v7 = vld [vmem:[%s380_s2] sm:$0xff]  ;;  %v318_v8 = vmov 0.0   ;;  %vm319_vm2 = vmmov 0   ;;  %vm152_vm3 = vcmask 1043456   ;;  %v144_v25 = vlaneseq }
   0x7   :  { %266 = vmatpush3.msra.mxu0 %v23_v2  ;;  %282 = vset.pattern.permute.xlu1 %v317_v6  ;;  %v137_v23 = vld [vmem:[%s381_s3] sm:$0x1]  ;;  %vm148_vm4 = vcmask 97280   ;;  %s320_s30 = smov [#allocation3]   ;;  %vm232_vm5 = vcmask 57344  }
   0x8   :  { %268 = vmatmul.mubr.msk.f32.vlgmr.msra.gmra.mxu0 %vm39_vm1, %v26_v5  ;;  %270 = vmatprep.subr.mxu1 %v318_v8  ;;  %v145_v26 = vshrl.u32 %v144_v25, 7  ;;  %s240_s3 = sshll.u32 %s320_s30, 4  ;;  %s241_s3 = int_to_ptr.vmem [resolvable:$true] %s240_s3 }
   0x9   :  { %274 = vmatprep.mubr.msk.f32.mxu1 %vm319_vm2, %v318_v8  ;;  %v138_v9 = vld [vmem:[#allocation2] sm:$0x1]  ;;  %s295_s6 = scalar_lea.vmem %s241_s3, 16  ;;  %s299_s7 = scalar_lea.vmem %s241_s3, 32 }
   0xa   :  { %31 = vperm.xlu0 %281, %v27_v7   ;;  %141 = vperm.xlu1 %282, %v138_v9   ;;  %v146_v27 = vsub.s32 0, %v145_v26  ;;  %p296_p0 = scmp.ne.s32.totalorder %s241_s3, %s295_s6  ;;  %p300_p1 = scmp.lt.s32.totalorder %s241_s3, %s241_s3 }
   0xb   :  { %p301_p2 = scmp.lt.s32.totalorder %s299_s7, %s295_s6 }
   0xd   :  { %p302_p3 = por %p301_p2, %p300_p1 }
   0xf   :  { %p303_p4 = pnand %p302_p3, %p296_p0 }
  0x81   :  { %v37_v10 = vpop.permute.xlu0 %36 }
  0x85   :  { %v32_v13 = vpop.permute.xlu0 %31  ;;  %v142_v28 = vpop.permute.xlu1 %141 }
  0x86   :  { %v147_v29 = vrot.slane %v142_v28, %v146_v27 }
  0xc8   :  { %v269_v11 = vpop.f32.mrf.mxu0 }
  0xc9   :  { %v122_v12 = vadd.f32 %v269_v11, %v37_v10 }
  0xca   :  { %v116_v14 = vpop.f32.mrf.mxu0 }
  0xcb   :  { %v252_v15 = vmul.f32 -1.442695, %v122_v12  ;;  %v117_v16 = vadd.f32 %v116_v14, %v32_v13 }
  0xcd   :  { %283 = vpow2.f32 %v252_v15  ;;  %v251_v17 = vmul.f32 -1.442695, %v117_v16 }
  0xcf   :  { %285 = vpow2.f32 %v251_v17 }
  0xda   :  { %v284_v18 = vpop.eup %283 }
  0xdb   :  { %v132_v19 = vadd.f32 1.0, %v284_v18 }
  0xdc   :  { %v286_v20 = vpop.eup %285 }
  0xdd   :  { %287 = vrcp.f32 %v132_v19  ;;  %v131_v21 = vadd.f32 1.0, %v286_v20 }
  0xdf   :  { %289 = vrcp.f32 %v131_v21 }
  0xea   :  { %v288_v22 = vpop.eup %287 }
  0xeb   :  { %271 = vmatpush3.msk.msra.mxu1 %vm152_vm3, %v288_v22 }
  0xec   :  { %v290_v24 = vpop.eup %289  ;;  %272 = vmatprep.subr.mxu1 %v318_v8 }
  0xed   :  { %273 = vmatpush3.msra.mxu1 %v290_v24 }
  0xee   :  { %275 = vmatmul.mubr.msk.f32.vlgmr.msra.gmra.mxu1 %vm148_vm4, %v137_v23 }
 0x1ae   :  { %v222_v30 = vpop.f32.mrf.mxu1 }
 0x1af   :  { %v223_v31 = vadd.f32 %v222_v30, %v147_v29 }
 0x1b0   :  { %v276_v32 = vpop.f32.mrf.mxu1 }
 0x1b1   :  { %v255_v33 = vmul.f32 -1.442695, %v223_v31 }
 0x1b3   :  { %291 = vpow2.f32 %v255_v33 }
 0x1c0   :  { %v292_v34 = vpop.eup %291 }
 0x1c1   :  { %v229_v35 = vadd.f32 1.0, %v292_v34 }
 0x1c3   :  { %293 = vrcp.f32 %v229_v35 }
 0x1d0   :  { %v294_v36 = vpop.eup %293 }
 0x1d1   :  { %233 = vst.msk [vmem:[#allocation3] sm:$0x1] %vm232_vm5, %v294_v36 }
 0x1d2   :  { %306 = shalt.err (!%p303_p4)
}
 0x1d3   :  { %243 = dma.vmem_to_hbm [thread:$0]  %s241_s3, 16, %s383_s5, [#allocation4]  }
 0x1d4   :  { %315 = dma.done.wait [#allocation4], 16  }
 0x1d5   :  { %316 = vsyncadd [#allocation4], 4294967280 }
 0x1d6   :  { %247 = vsyncpa [#allocation4], 1 }

</bundles_post_ra>
